<compile_context>
chip_gen: v6e
topology: v6e:2x2x1
jax: 0.10.0
libtpu: 0.0.40
codegen_flags: <defaults>
</compile_context>

<pallas_src>
import functools

import jax
import jax.numpy as jnp
from jax.experimental import pallas as pl
from jax.experimental.pallas import tpu as pltpu


def _attention_kernel(x_ref, wqkv_ref, bqkv_ref, wp_ref, bp_ref, o_ref,
                      *, batch, seq, dim, n_heads, head_dim, inv_scale):
    f32 = jnp.float32
    bf16 = jnp.bfloat16

    # ---- Fused QKV projection: one MXU matmul with a 3*D-wide output. ----
    x_bf = x_ref[...].astype(bf16)                                     # (B*N, D)
    qkv = jnp.dot(x_bf, wqkv_ref[...],
                  preferred_element_type=f32) + bqkv_ref[...]          # (B*N, 3D) f32

    # Pre-scale q once instead of scaling every (N, N) score matrix.
    q = (qkv[:, :dim] * inv_scale).reshape(batch, seq, dim)            # (B, N, D)
    k = qkv[:, dim:2 * dim].reshape(batch, seq, dim)                   # (B, N, D)
    v = qkv[:, 2 * dim:].reshape(batch, seq, dim)                      # (B, N, D)

    # ---- Per-head attention, batched over the batch dim, with the output
    #      projection fused into the head loop (register accumulator). ----
    out_acc = jnp.zeros((batch * seq, dim), f32)
    for h in range(n_heads):
        lo = h * head_dim
        hi = lo + head_dim
        qh = q[:, :, lo:hi].astype(bf16)                               # (B, N, hd)
        kh = k[:, :, lo:hi].astype(bf16)                               # (B, N, hd)
        vh = v[:, :, lo:hi].astype(bf16)                               # (B, N, hd)

        # q @ k^T with the transpose folded into the contraction dims.
        s = jnp.einsum("bnd,bmd->bnm", qh, kh,
                       preferred_element_type=f32)                     # (B, N, N) f32
        s = s - jnp.max(s, axis=-1, keepdims=True)
        p = jnp.exp(s)
        denom = jnp.sum(p, axis=-1, keepdims=True)
        p = p * pl.reciprocal(denom, approx=True)                      # EUP, not VALU
        # TODO(synk): dropout1 (p=0.2) skipped -- eval-mode forward.

        ctx_h = jnp.einsum("bnm,bmd->bnd", p.astype(bf16), vh,
                           preferred_element_type=f32)                 # (B, N, hd)
        ctx_h2 = ctx_h.reshape(batch * seq, head_dim).astype(bf16)     # (B*N, hd)

        # Fused output projection: head h touches only rows [lo:hi) of wp.
        out_acc = out_acc + jnp.dot(ctx_h2, wp_ref[lo:hi, :],
                                    preferred_element_type=f32)        # (B*N, D)

    out = out_acc + bp_ref[...]                                        # (B*N, D)
    # TODO(synk): dropout2 (p=0.2) skipped -- eval-mode forward.
    o_ref[...] = out.astype(o_ref.dtype)


def attention_pallas(x, params, *, n_heads):
    """x: (B, N, D) float32.  params: dict of f32 weights/biases (Linear as x@W+b)."""
    B, N, D = x.shape
    head_dim = D // n_heads
    inv_scale = 1.0 / (float(D) ** 0.5)     # module: scale = dim ** 0.5

    # Fused QKV weight/bias; matmul operands pre-cast to bf16, biases stay f32.
    wqkv = jnp.concatenate([params["wq"], params["wk"], params["wv"]],
                           axis=1).astype(jnp.bfloat16)                # (D, 3D) bf16
    bqkv = jnp.concatenate([params["bq"], params["bk"], params["bv"]],
                           axis=1)                                     # (1, 3D) f32
    wp = params["wp"].astype(jnp.bfloat16)                             # (D, D) bf16
    bp = params["bp"]                                                  # (1, D) f32

    x2 = x.reshape(B * N, D)                                           # token slab

    kernel = functools.partial(_attention_kernel,
                               batch=B, seq=N, dim=D,
                               n_heads=n_heads, head_dim=head_dim,
                               inv_scale=inv_scale)

    out2 = pl.pallas_call(
        kernel,
        out_shape=jax.ShapeDtypeStruct((B * N, D), x.dtype),
        grid_spec=pltpu.PrefetchScalarGridSpec(
            num_scalar_prefetch=0,
            grid=(1,),                                   # single step: tiny problem
            in_specs=[
                pl.BlockSpec((B * N, D), lambda i: (0, 0)),    # x (flattened tokens)
                pl.BlockSpec((D, 3 * D), lambda i: (0, 0)),    # fused QKV weight
                pl.BlockSpec((1, 3 * D), lambda i: (0, 0)),    # fused QKV bias
                pl.BlockSpec((D, D), lambda i: (0, 0)),        # proj weight
                pl.BlockSpec((1, D), lambda i: (0, 0)),        # proj bias
            ],
            out_specs=pl.BlockSpec((B * N, D), lambda i: (0, 0)),
        ),
        compiler_params=pltpu.CompilerParams(
            dimension_semantics=("arbitrary",),
            vmem_limit_bytes=32 * 1024 * 1024),
    )(x2, wqkv, bqkv, wp, bp)

    return out2.reshape(B, N, D)


def attention_reference_f32(x, params, *, n_heads):
    """Pure-JAX f32 reference mirroring the PyTorch forward (dropout = identity)."""
    B, N, D = x.shape
    hd = D // n_heads
    scale = float(D) ** 0.5

    q = x @ params["wq"] + params["bq"][0]
    k = x @ params["wk"] + params["bk"][0]
    v = x @ params["wv"] + params["bv"][0]

    def split(t):
        return t.reshape(B, N, n_heads, hd).transpose(0, 2, 1, 3)      # (B,H,N,hd)

    q, k, v = split(q), split(k), split(v)
    scores = jnp.einsum("bhnd,bhmd->bhnm", q, k) / scale
    probs = jax.nn.softmax(scores, axis=-1)
    ctx = jnp.einsum("bhnm,bhmd->bhnd", probs, v)
    ctx = ctx.transpose(0, 2, 1, 3).reshape(B, N, D)
    return ctx @ params["wp"] + params["bp"][0]


def attention_reference_bf16(x, params, *, n_heads):
    """Reference mirroring the kernel's bf16 operand casts (f32 accumulation,
    exact division instead of the approx reciprocal)."""
    B, N, D = x.shape
    hd = D // n_heads
    inv_scale = 1.0 / (float(D) ** 0.5)
    bf16, f32 = jnp.bfloat16, jnp.float32

    wqkv = jnp.concatenate([params["wq"], params["wk"], params["wv"]], 1).astype(bf16)
    bqkv = jnp.concatenate([params["bq"], params["bk"], params["bv"]], 1)
    wp = params["wp"].astype(bf16)
    x2 = x.reshape(B * N, D).astype(bf16)
    qkv = jnp.dot(x2, wqkv, preferred_element_type=f32) + bqkv

    q = (qkv[:, :D] * inv_scale).reshape(B, N, D)
    k = qkv[:, D:2 * D].reshape(B, N, D)
    v = qkv[:, 2 * D:].reshape(B, N, D)

    out = jnp.zeros((B * N, D), f32)
    for h in range(n_heads):
        lo, hi = h * hd, (h + 1) * hd
        qh, kh, vh = (t[:, :, lo:hi].astype(bf16) for t in (q, k, v))
        s = jnp.einsum("bnd,bmd->bnm", qh, kh, preferred_element_type=f32)
        s = s - s.max(-1, keepdims=True)
        p = jnp.exp(s)
        p = p / p.sum(-1, keepdims=True)
        ctx_h = jnp.einsum("bnm,bmd->bnd", p.astype(bf16), vh,
                           preferred_element_type=f32)
        out = out + jnp.dot(ctx_h.reshape(B * N, hd).astype(bf16), wp[lo:hi, :],
                            preferred_element_type=f32)
    out = out + params["bp"]
    return out.reshape(B, N, D)


def make_params(key, dim):
    keys = jax.random.split(key, 8)
    init = lambda k, shape: (jax.random.normal(k, shape, jnp.float32)
                             * (1.0 / jnp.sqrt(dim)))
    return {
        "wq": init(keys[0], (dim, dim)), "bq": init(keys[1], (1, dim)),
        "wk": init(keys[2], (dim, dim)), "bk": init(keys[3], (1, dim)),
        "wv": init(keys[4], (dim, dim)), "bv": init(keys[5], (1, dim)),
        "wp": init(keys[6], (dim, dim)), "bp": init(keys[7], (1, dim)),
    }


if __name__ == "__main__":
    B, N, D = 2, 8, 32          # batch, n_patch, dim
    n_heads = 4                 # head_dim = 8

    root = jax.random.PRNGKey(0)
    kx, kp = jax.random.split(root)
    x = jax.random.normal(kx, (B, N, D), jnp.float32)
    params = make_params(kp, D)

    out = attention_pallas(x, params, n_heads=n_heads)
    out = jax.block_until_ready(out)
    assert out.shape == (B, N, D)

    # Tight check vs. a reference that mirrors the kernel's bf16 operand casts
    # (only the approx reciprocal / accumulation order differ).
    ref_mirror = attention_reference_bf16(x, params, n_heads=n_heads)
    assert jnp.allclose(out, ref_mirror, atol=2e-2, rtol=2e-2), \
        "mismatch vs bf16-mirrored reference"

    # Loose check vs. the pure-f32 module semantics (bf16 MXU operand quantization).
    ref_f32 = attention_reference_f32(x, params, n_heads=n_heads)
    assert jnp.allclose(out, ref_f32, atol=1e-1, rtol=1e-1), \
        "mismatch vs f32 reference"

    print("KERNEL_OK")
</pallas_src>

<mosaic_0001>
module attributes {stable_mosaic.version = 11 : i64} {
  func.func @_attention_kernel(%arg0: i32, %arg1: memref<16x32xf32, #tpu.memory_space<vmem>>, %arg2: memref<32x96xbf16, #tpu.memory_space<vmem>>, %arg3: memref<1x96xf32, #tpu.memory_space<vmem>>, %arg4: memref<32x32xbf16, #tpu.memory_space<vmem>>, %arg5: memref<1x32xf32, #tpu.memory_space<vmem>>, %arg6: memref<16x32xf32, #tpu.memory_space<vmem>>) attributes {dimension_semantics = [#tpu.dimension_semantics<arbitrary>], iteration_bounds = array<i64: 1>, scalar_prefetch = 0 : i64, scratch_operands = 0 : i64, tpu.core_type = #tpu.core_type<tc>, window_params = [{pipeline_mode = #tpu.pipeline_mode<synchronous>, transform_indices = @transform_0, window_bounds = array<i64: 16, 32>}, {pipeline_mode = #tpu.pipeline_mode<synchronous>, transform_indices = @transform_1, window_bounds = array<i64: 32, 96>}, {pipeline_mode = #tpu.pipeline_mode<synchronous>, transform_indices = @transform_2, window_bounds = array<i64: 1, 96>}, {pipeline_mode = #tpu.pipeline_mode<synchronous>, transform_indices = @transform_3, window_bounds = array<i64: 32, 32>}, {pipeline_mode = #tpu.pipeline_mode<synchronous>, transform_indices = @transform_4, window_bounds = array<i64: 1, 32>}, {pipeline_mode = #tpu.pipeline_mode<synchronous>, transform_indices = @transform_5, window_bounds = array<i64: 16, 32>}]} {
    %c0 = arith.constant 0 : index
    %c0_0 = arith.constant 0 : index
    %0 = vector.load %arg1[%c0, %c0_0] : memref<16x32xf32, #tpu.memory_space<vmem>>, vector<16x32xf32>
    %1 = arith.truncf %0 : vector<16x32xf32> to vector<16x32xbf16>
    %c0_1 = arith.constant 0 : index
    %c0_2 = arith.constant 0 : index
    %2 = vector.load %arg2[%c0_1, %c0_2] : memref<32x96xbf16, #tpu.memory_space<vmem>>, vector<32x96xbf16>
    %cst = arith.constant dense<0.000000e+00> : vector<16x96xf32>
    %3 = tpu.matmul %1, %2, %cst {dimension_numbers = #tpu.dot_dimension_numbers<[1], [0], [0], [1], [0, 0, 1, 1], [], []>} : vector<16x32xbf16>, vector<32x96xbf16>, vector<16x96xf32> -> vector<16x96xf32>
    %c0_3 = arith.constant 0 : index
    %c0_4 = arith.constant 0 : index
    %4 = vector.load %arg3[%c0_3, %c0_4] : memref<1x96xf32, #tpu.memory_space<vmem>>, vector<1x96xf32>
    %5 = vector.broadcast %4 : vector<1x96xf32> to vector<16x96xf32>
    %6 = arith.addf %3, %5 : vector<16x96xf32>
    %7 = vector.extract_strided_slice %6 {offsets = [0, 0], sizes = [16, 32], strides = [1, 1]} : vector<16x96xf32> to vector<16x32xf32>
    %cst_5 = arith.constant 0.176776692 : f32
    %8 = vector.broadcast %cst_5 : f32 to vector<16x32xf32>
    %9 = arith.mulf %7, %8 : vector<16x32xf32>
    %10 = vector.shape_cast %9 : vector<16x32xf32> to vector<2x8x32xf32>
    %11 = vector.extract_strided_slice %6 {offsets = [0, 32], sizes = [16, 32], strides = [1, 1]} : vector<16x96xf32> to vector<16x32xf32>
    %12 = vector.shape_cast %11 : vector<16x32xf32> to vector<2x8x32xf32>
    %13 = vector.extract_strided_slice %6 {offsets = [0, 64], sizes = [16, 32], strides = [1, 1]} : vector<16x96xf32> to vector<16x32xf32>
    %14 = vector.shape_cast %13 : vector<16x32xf32> to vector<2x8x32xf32>
    %cst_6 = arith.constant 0.000000e+00 : f32
    %15 = vector.broadcast %cst_6 : f32 to vector<16x32xf32>
    %16 = vector.extract_strided_slice %10 {offsets = [0, 0, 0], sizes = [2, 8, 8], strides = [1, 1, 1]} : vector<2x8x32xf32> to vector<2x8x8xf32>
    %17 = arith.truncf %16 : vector<2x8x8xf32> to vector<2x8x8xbf16>
    %18 = vector.extract_strided_slice %12 {offsets = [0, 0, 0], sizes = [2, 8, 8], strides = [1, 1, 1]} : vector<2x8x32xf32> to vector<2x8x8xf32>
    %19 = arith.truncf %18 : vector<2x8x8xf32> to vector<2x8x8xbf16>
    %20 = vector.extract_strided_slice %14 {offsets = [0, 0, 0], sizes = [2, 8, 8], strides = [1, 1, 1]} : vector<2x8x32xf32> to vector<2x8x8xf32>
    %21 = arith.truncf %20 : vector<2x8x8xf32> to vector<2x8x8xbf16>
    "tpu.trace_start"() <{level = 10 : i32, message = "bnd,bmd->bnm"}> : () -> ()
    %cst_7 = arith.constant dense<0.000000e+00> : vector<2x8x8xf32>
    %22 = tpu.matmul %17, %19, %cst_7 {dimension_numbers = #tpu.dot_dimension_numbers<[2], [2], [1], [1], [0, 0, 0, 1, 1, 1], [0], [0]>} : vector<2x8x8xbf16>, vector<2x8x8xbf16>, vector<2x8x8xf32> -> vector<2x8x8xf32>
    "tpu.trace_stop"() : () -> ()
    %cst_8 = arith.constant dense<0xFF800000> : vector<2x8xf32>
    %23 = vector.multi_reduction <maximumf>, %22, %cst_8 [2] : vector<2x8x8xf32> to vector<2x8xf32>
    %24 = vector.shape_cast %23 : vector<2x8xf32> to vector<2x8x1xf32>
    %25 = vector.broadcast %24 : vector<2x8x1xf32> to vector<2x8x8xf32>
    %26 = arith.subf %22, %25 : vector<2x8x8xf32>
    %27 = math.exp %26 : vector<2x8x8xf32>
    %cst_9 = arith.constant dense<0.000000e+00> : vector<2x8xf32>
    %28 = vector.multi_reduction <add>, %27, %cst_9 [2] : vector<2x8x8xf32> to vector<2x8xf32>
    %29 = vector.shape_cast %28 : vector<2x8xf32> to vector<2x8x1xf32>
    %30 = tpu.reciprocal %29 {approx = true} : vector<2x8x1xf32> -> vector<2x8x1xf32>
    %31 = vector.broadcast %30 : vector<2x8x1xf32> to vector<2x8x8xf32>
    %32 = arith.mulf %27, %31 : vector<2x8x8xf32>
    %33 = arith.truncf %32 : vector<2x8x8xf32> to vector<2x8x8xbf16>
    "tpu.trace_start"() <{level = 10 : i32, message = "bnm,bmd->bnd"}> : () -> ()
    %cst_10 = arith.constant dense<0.000000e+00> : vector<2x8x8xf32>
    %34 = tpu.matmul %33, %21, %cst_10 {dimension_numbers = #tpu.dot_dimension_numbers<[2], [1], [1], [2], [0, 0, 0, 1, 1, 2], [0], [0]>} : vector<2x8x8xbf16>, vector<2x8x8xbf16>, vector<2x8x8xf32> -> vector<2x8x8xf32>
    "tpu.trace_stop"() : () -> ()
    %35 = vector.shape_cast %34 : vector<2x8x8xf32> to vector<16x8xf32>
    %36 = arith.truncf %35 : vector<16x8xf32> to vector<16x8xbf16>
    %c0_11 = arith.constant 0 : index
    %c0_12 = arith.constant 0 : index
    %37 = vector.load %arg4[%c0_11, %c0_12] : memref<32x32xbf16, #tpu.memory_space<vmem>>, vector<8x32xbf16>
    %cst_13 = arith.constant dense<0.000000e+00> : vector<16x32xf32>
    %38 = tpu.matmul %36, %37, %cst_13 {dimension_numbers = #tpu.dot_dimension_numbers<[1], [0], [0], [1], [0, 0, 1, 1], [], []>} : vector<16x8xbf16>, vector<8x32xbf16>, vector<16x32xf32> -> vector<16x32xf32>
    %39 = arith.addf %15, %38 : vector<16x32xf32>
    %40 = vector.extract_strided_slice %10 {offsets = [0, 0, 8], sizes = [2, 8, 8], strides = [1, 1, 1]} : vector<2x8x32xf32> to vector<2x8x8xf32>
    %41 = arith.truncf %40 : vector<2x8x8xf32> to vector<2x8x8xbf16>
    %42 = vector.extract_strided_slice %12 {offsets = [0, 0, 8], sizes = [2, 8, 8], strides = [1, 1, 1]} : vector<2x8x32xf32> to vector<2x8x8xf32>
    %43 = arith.truncf %42 : vector<2x8x8xf32> to vector<2x8x8xbf16>
    %44 = vector.extract_strided_slice %14 {offsets = [0, 0, 8], sizes = [2, 8, 8], strides = [1, 1, 1]} : vector<2x8x32xf32> to vector<2x8x8xf32>
    %45 = arith.truncf %44 : vector<2x8x8xf32> to vector<2x8x8xbf16>
    "tpu.trace_start"() <{level = 10 : i32, message = "bnd,bmd->bnm"}> : () -> ()
    %cst_14 = arith.constant dense<0.000000e+00> : vector<2x8x8xf32>
    %46 = tpu.matmul %41, %43, %cst_14 {dimension_numbers = #tpu.dot_dimension_numbers<[2], [2], [1], [1], [0, 0, 0, 1, 1, 1], [0], [0]>} : vector<2x8x8xbf16>, vector<2x8x8xbf16>, vector<2x8x8xf32> -> vector<2x8x8xf32>
    "tpu.trace_stop"() : () -> ()
    %cst_15 = arith.constant dense<0xFF800000> : vector<2x8xf32>
    %47 = vector.multi_reduction <maximumf>, %46, %cst_15 [2] : vector<2x8x8xf32> to vector<2x8xf32>
    %48 = vector.shape_cast %47 : vector<2x8xf32> to vector<2x8x1xf32>
    %49 = vector.broadcast %48 : vector<2x8x1xf32> to vector<2x8x8xf32>
    %50 = arith.subf %46, %49 : vector<2x8x8xf32>
    %51 = math.exp %50 : vector<2x8x8xf32>
    %cst_16 = arith.constant dense<0.000000e+00> : vector<2x8xf32>
    %52 = vector.multi_reduction <add>, %51, %cst_16 [2] : vector<2x8x8xf32> to vector<2x8xf32>
    %53 = vector.shape_cast %52 : vector<2x8xf32> to vector<2x8x1xf32>
    %54 = tpu.reciprocal %53 {approx = true} : vector<2x8x1xf32> -> vector<2x8x1xf32>
    %55 = vector.broadcast %54 : vector<2x8x1xf32> to vector<2x8x8xf32>
    %56 = arith.mulf %51, %55 : vector<2x8x8xf32>
    %57 = arith.truncf %56 : vector<2x8x8xf32> to vector<2x8x8xbf16>
    "tpu.trace_start"() <{level = 10 : i32, message = "bnm,bmd->bnd"}> : () -> ()
    %cst_17 = arith.constant dense<0.000000e+00> : vector<2x8x8xf32>
    %58 = tpu.matmul %57, %45, %cst_17 {dimension_numbers = #tpu.dot_dimension_numbers<[2], [1], [1], [2], [0, 0, 0, 1, 1, 2], [0], [0]>} : vector<2x8x8xbf16>, vector<2x8x8xbf16>, vector<2x8x8xf32> -> vector<2x8x8xf32>
    "tpu.trace_stop"() : () -> ()
    %59 = vector.shape_cast %58 : vector<2x8x8xf32> to vector<16x8xf32>
    %60 = arith.truncf %59 : vector<16x8xf32> to vector<16x8xbf16>
    %c8 = arith.constant 8 : index
    %c0_18 = arith.constant 0 : index
    %61 = vector.load %arg4[%c8, %c0_18] : memref<32x32xbf16, #tpu.memory_space<vmem>>, vector<8x32xbf16>
    %cst_19 = arith.constant dense<0.000000e+00> : vector<16x32xf32>
    %62 = tpu.matmul %60, %61, %cst_19 {dimension_numbers = #tpu.dot_dimension_numbers<[1], [0], [0], [1], [0, 0, 1, 1], [], []>} : vector<16x8xbf16>, vector<8x32xbf16>, vector<16x32xf32> -> vector<16x32xf32>
    %63 = arith.addf %39, %62 : vector<16x32xf32>
    %64 = vector.extract_strided_slice %10 {offsets = [0, 0, 16], sizes = [2, 8, 8], strides = [1, 1, 1]} : vector<2x8x32xf32> to vector<2x8x8xf32>
    %65 = arith.truncf %64 : vector<2x8x8xf32> to vector<2x8x8xbf16>
    %66 = vector.extract_strided_slice %12 {offsets = [0, 0, 16], sizes = [2, 8, 8], strides = [1, 1, 1]} : vector<2x8x32xf32> to vector<2x8x8xf32>
    %67 = arith.truncf %66 : vector<2x8x8xf32> to vector<2x8x8xbf16>
    %68 = vector.extract_strided_slice %14 {offsets = [0, 0, 16], sizes = [2, 8, 8], strides = [1, 1, 1]} : vector<2x8x32xf32> to vector<2x8x8xf32>
    %69 = arith.truncf %68 : vector<2x8x8xf32> to vector<2x8x8xbf16>
    "tpu.trace_start"() <{level = 10 : i32, message = "bnd,bmd->bnm"}> : () -> ()
    %cst_20 = arith.constant dense<0.000000e+00> : vector<2x8x8xf32>
    %70 = tpu.matmul %65, %67, %cst_20 {dimension_numbers = #tpu.dot_dimension_numbers<[2], [2], [1], [1], [0, 0, 0, 1, 1, 1], [0], [0]>} : vector<2x8x8xbf16>, vector<2x8x8xbf16>, vector<2x8x8xf32> -> vector<2x8x8xf32>
    "tpu.trace_stop"() : () -> ()
    %cst_21 = arith.constant dense<0xFF800000> : vector<2x8xf32>
    %71 = vector.multi_reduction <maximumf>, %70, %cst_21 [2] : vector<2x8x8xf32> to vector<2x8xf32>
    %72 = vector.shape_cast %71 : vector<2x8xf32> to vector<2x8x1xf32>
    %73 = vector.broadcast %72 : vector<2x8x1xf32> to vector<2x8x8xf32>
    %74 = arith.subf %70, %73 : vector<2x8x8xf32>
    %75 = math.exp %74 : vector<2x8x8xf32>
    %cst_22 = arith.constant dense<0.000000e+00> : vector<2x8xf32>
    %76 = vector.multi_reduction <add>, %75, %cst_22 [2] : vector<2x8x8xf32> to vector<2x8xf32>
    %77 = vector.shape_cast %76 : vector<2x8xf32> to vector<2x8x1xf32>
    %78 = tpu.reciprocal %77 {approx = true} : vector<2x8x1xf32> -> vector<2x8x1xf32>
    %79 = vector.broadcast %78 : vector<2x8x1xf32> to vector<2x8x8xf32>
    %80 = arith.mulf %75, %79 : vector<2x8x8xf32>
    %81 = arith.truncf %80 : vector<2x8x8xf32> to vector<2x8x8xbf16>
    "tpu.trace_start"() <{level = 10 : i32, message = "bnm,bmd->bnd"}> : () -> ()
    %cst_23 = arith.constant dense<0.000000e+00> : vector<2x8x8xf32>
    %82 = tpu.matmul %81, %69, %cst_23 {dimension_numbers = #tpu.dot_dimension_numbers<[2], [1], [1], [2], [0, 0, 0, 1, 1, 2], [0], [0]>} : vector<2x8x8xbf16>, vector<2x8x8xbf16>, vector<2x8x8xf32> -> vector<2x8x8xf32>
    "tpu.trace_stop"() : () -> ()
    %83 = vector.shape_cast %82 : vector<2x8x8xf32> to vector<16x8xf32>
    %84 = arith.truncf %83 : vector<16x8xf32> to vector<16x8xbf16>
    %c16 = arith.constant 16 : index
    %c0_24 = arith.constant 0 : index
    %85 = vector.load %arg4[%c16, %c0_24] : memref<32x32xbf16, #tpu.memory_space<vmem>>, vector<8x32xbf16>
    %cst_25 = arith.constant dense<0.000000e+00> : vector<16x32xf32>
    %86 = tpu.matmul %84, %85, %cst_25 {dimension_numbers = #tpu.dot_dimension_numbers<[1], [0], [0], [1], [0, 0, 1, 1], [], []>} : vector<16x8xbf16>, vector<8x32xbf16>, vector<16x32xf32> -> vector<16x32xf32>
    %87 = arith.addf %63, %86 : vector<16x32xf32>
    %88 = vector.extract_strided_slice %10 {offsets = [0, 0, 24], sizes = [2, 8, 8], strides = [1, 1, 1]} : vector<2x8x32xf32> to vector<2x8x8xf32>
    %89 = arith.truncf %88 : vector<2x8x8xf32> to vector<2x8x8xbf16>
    %90 = vector.extract_strided_slice %12 {offsets = [0, 0, 24], sizes = [2, 8, 8], strides = [1, 1, 1]} : vector<2x8x32xf32> to vector<2x8x8xf32>
    %91 = arith.truncf %90 : vector<2x8x8xf32> to vector<2x8x8xbf16>
    %92 = vector.extract_strided_slice %14 {offsets = [0, 0, 24], sizes = [2, 8, 8], strides = [1, 1, 1]} : vector<2x8x32xf32> to vector<2x8x8xf32>
    %93 = arith.truncf %92 : vector<2x8x8xf32> to vector<2x8x8xbf16>
    "tpu.trace_start"() <{level = 10 : i32, message = "bnd,bmd->bnm"}> : () -> ()
    %cst_26 = arith.constant dense<0.000000e+00> : vector<2x8x8xf32>
    %94 = tpu.matmul %89, %91, %cst_26 {dimension_numbers = #tpu.dot_dimension_numbers<[2], [2], [1], [1], [0, 0, 0, 1, 1, 1], [0], [0]>} : vector<2x8x8xbf16>, vector<2x8x8xbf16>, vector<2x8x8xf32> -> vector<2x8x8xf32>
    "tpu.trace_stop"() : () -> ()
    %cst_27 = arith.constant dense<0xFF800000> : vector<2x8xf32>
    %95 = vector.multi_reduction <maximumf>, %94, %cst_27 [2] : vector<2x8x8xf32> to vector<2x8xf32>
    %96 = vector.shape_cast %95 : vector<2x8xf32> to vector<2x8x1xf32>
    %97 = vector.broadcast %96 : vector<2x8x1xf32> to vector<2x8x8xf32>
    %98 = arith.subf %94, %97 : vector<2x8x8xf32>
    %99 = math.exp %98 : vector<2x8x8xf32>
    %cst_28 = arith.constant dense<0.000000e+00> : vector<2x8xf32>
    %100 = vector.multi_reduction <add>, %99, %cst_28 [2] : vector<2x8x8xf32> to vector<2x8xf32>
    %101 = vector.shape_cast %100 : vector<2x8xf32> to vector<2x8x1xf32>
    %102 = tpu.reciprocal %101 {approx = true} : vector<2x8x1xf32> -> vector<2x8x1xf32>
    %103 = vector.broadcast %102 : vector<2x8x1xf32> to vector<2x8x8xf32>
    %104 = arith.mulf %99, %103 : vector<2x8x8xf32>
    %105 = arith.truncf %104 : vector<2x8x8xf32> to vector<2x8x8xbf16>
    "tpu.trace_start"() <{level = 10 : i32, message = "bnm,bmd->bnd"}> : () -> ()
    %cst_29 = arith.constant dense<0.000000e+00> : vector<2x8x8xf32>
    %106 = tpu.matmul %105, %93, %cst_29 {dimension_numbers = #tpu.dot_dimension_numbers<[2], [1], [1], [2], [0, 0, 0, 1, 1, 2], [0], [0]>} : vector<2x8x8xbf16>, vector<2x8x8xbf16>, vector<2x8x8xf32> -> vector<2x8x8xf32>
    "tpu.trace_stop"() : () -> ()
    %107 = vector.shape_cast %106 : vector<2x8x8xf32> to vector<16x8xf32>
    %108 = arith.truncf %107 : vector<16x8xf32> to vector<16x8xbf16>
    %c24 = arith.constant 24 : index
    %c0_30 = arith.constant 0 : index
    %109 = vector.load %arg4[%c24, %c0_30] : memref<32x32xbf16, #tpu.memory_space<vmem>>, vector<8x32xbf16>
    %cst_31 = arith.constant dense<0.000000e+00> : vector<16x32xf32>
    %110 = tpu.matmul %108, %109, %cst_31 {dimension_numbers = #tpu.dot_dimension_numbers<[1], [0], [0], [1], [0, 0, 1, 1], [], []>} : vector<16x8xbf16>, vector<8x32xbf16>, vector<16x32xf32> -> vector<16x32xf32>
    %111 = arith.addf %87, %110 : vector<16x32xf32>
    %c0_32 = arith.constant 0 : index
    %c0_33 = arith.constant 0 : index
    %112 = vector.load %arg5[%c0_32, %c0_33] : memref<1x32xf32, #tpu.memory_space<vmem>>, vector<1x32xf32>
    %113 = vector.broadcast %112 : vector<1x32xf32> to vector<16x32xf32>
    %114 = arith.addf %111, %113 : vector<16x32xf32>
    %c0_34 = arith.constant 0 : index
    %c0_35 = arith.constant 0 : index
    %115 = vector.load %arg6[%c0_34, %c0_35] : memref<16x32xf32, #tpu.memory_space<vmem>>, vector<16x32xf32>
    tpu.vector_store %arg6[%c0_34, %c0_35], %114 {strides = array<i32>} : memref<16x32xf32, #tpu.memory_space<vmem>>, vector<16x32xf32>,
    return
  }
  func.func @transform_0(%arg0: i32) -> (i32, i32) {
    %c0_i32 = arith.constant 0 : i32
    %c0_i32_0 = arith.constant 0 : i32
    %c0_i32_1 = arith.constant 0 : i32
    return %c0_i32, %c0_i32_0 : i32, i32
  }
  func.func @transform_1(%arg0: i32) -> (i32, i32) {
    %c0_i32 = arith.constant 0 : i32
    %c0_i32_0 = arith.constant 0 : i32
    %c0_i32_1 = arith.constant 0 : i32
    return %c0_i32, %c0_i32_0 : i32, i32
  }
  func.func @transform_2(%arg0: i32) -> (i32, i32) {
    %c0_i32 = arith.constant 0 : i32
    %c0_i32_0 = arith.constant 0 : i32
    %c0_i32_1 = arith.constant 0 : i32
    return %c0_i32, %c0_i32_0 : i32, i32
  }
  func.func @transform_3(%arg0: i32) -> (i32, i32) {
    %c0_i32 = arith.constant 0 : i32
    %c0_i32_0 = arith.constant 0 : i32
    %c0_i32_1 = arith.constant 0 : i32
    return %c0_i32, %c0_i32_0 : i32, i32
  }
  func.func @transform_4(%arg0: i32) -> (i32, i32) {
    %c0_i32 = arith.constant 0 : i32
    %c0_i32_0 = arith.constant 0 : i32
    %c0_i32_1 = arith.constant 0 : i32
    return %c0_i32, %c0_i32_0 : i32, i32
  }
  func.func @transform_5(%arg0: i32) -> (i32, i32) {
    %c0_i32 = arith.constant 0 : i32
    %c0_i32_0 = arith.constant 0 : i32
    %c0_i32_1 = arith.constant 0 : i32
    return %c0_i32, %c0_i32_0 : i32, i32
  }
}

</mosaic_0001>

<bundles_post_ra>
// kernel: tpu_custom_call.1
= control target key start
LH: loop header
LB: loop body
LE: loop exit
PB: predicated region body
PF: predicated region fallthrough
CT: control target
= control target key end

     0   :  { %10 = vsyncpa [#allocation3], 0  ;;  %s1847_s0 = inlined_call_operand.hbm [shape: f32[16,32], index: 0, kind: input, shape index: {}]   ;;  %s1848_s1 = inlined_call_operand.hbm [shape: bf16[32,96], index: 1, kind: input, shape index: {}]   ;;  %s1849_s2 = inlined_call_operand.vmem [shape: f32[1,96], index: 2, kind: input, shape index: {}]   ;;  %s1850_s3 = inlined_call_operand.hbm [shape: bf16[32,32], index: 3, kind: input, shape index: {}]   ;;  %s1851_s4 = inlined_call_operand.vmem [shape: f32[1,32], index: 4, kind: input, shape index: {}]   ;;  %s1852_s5 = inlined_call_operand.hbm [shape: f32[16,32], index: 5, kind: output, shape index: {}]  }
   0x1   :  { %11 = vsyncpa [#allocation6], 0 }
   0x2   :  { %12 = vsyncpa [#allocation4], 0  ;;  %s1587_s18 = smov [#allocation5]  }
   0x3   :  { %s30_s19 = sshll.u32 %s1587_s18, 4  ;;  %s31_s19 = int_to_ptr.vmem [resolvable:$true] %s30_s19 }
   0x4   :  { %s1509_s20 = scalar_lea.vmem %s31_s19, 256  ;;  %p1514_p1 = scmp.lt.s32.totalorder %s31_s19, %s31_s19 }
   0x5   :  { %p1510_p0 = scmp.ne.s32.totalorder %s31_s19, %s1509_s20  ;;  %p1515_p2 = scmp.lt.s32.totalorder %s1509_s20, %s1509_s20 }
   0x7   :  { %p1516_p3 = por %p1515_p2, %p1514_p1 }
   0x9   :  { %p1517_p4 = pnand %p1516_p3, %p1510_p0 }
   0xb   :  { %1520 = shalt.err (!%p1517_p4)
}
   0xc   :  { %s1588_s21 = smov 64   ;;  %s1589_s22 = smov 4  }
   0xd   :  { %36 = dma.hbm_to_vmem [thread:$0]  %s1848_s1, 256, %s31_s19, [#allocation6], %s1588_s21, %s1588_s21, %s1589_s22  }
   0xe   :  { %s1590_s25 = smov [#allocation2]  }
   0xf   :  { %s18_s26 = sshll.u32 %s1590_s25, 4  ;;  %s19_s26 = int_to_ptr.vmem [resolvable:$true] %s18_s26 }
  0x10   :  { %s1529_s27 = scalar_lea.vmem %s19_s26, 256  ;;  %p1534_p6 = scmp.lt.s32.totalorder %s19_s26, %s19_s26 }
  0x11   :  { %p1530_p5 = scmp.ne.s32.totalorder %s19_s26, %s1529_s27  ;;  %p1535_p7 = scmp.lt.s32.totalorder %s1529_s27, %s1529_s27 }
  0x13   :  { %p1536_p8 = por %p1535_p7, %p1534_p6 }
  0x15   :  { %p1537_p9 = pnand %p1536_p8, %p1530_p5 }
  0x17   :  { %1540 = shalt.err (!%p1537_p9)
}
  0x18   :  { %s1591_s28 = smov 128   ;;  %s1592_s29 = smov 8  }
  0x19   :  { %24 = dma.hbm_to_vmem [thread:$0]  %s1847_s0, 256, %s19_s26, [#allocation3], %s1591_s28, %s1591_s28, %s1592_s29  }
  0x1a   :  { %s1593_s1 = smov [#allocation7]  }
  0x1b   :  { %s44_s7 = sshll.u32 %s1593_s1, 4  ;;  %s45_s7 = int_to_ptr.vmem [resolvable:$true] %s44_s7 }
  0x1c   :  { %s1549_s8 = scalar_lea.vmem %s45_s7, 256  ;;  %p1554_p11 = scmp.lt.s32.totalorder %s45_s7, %s45_s7 }
  0x1d   :  { %p1550_p10 = scmp.ne.s32.totalorder %s45_s7, %s1549_s8  ;;  %p1555_p12 = scmp.lt.s32.totalorder %s1549_s8, %s1549_s8 }
  0x1f   :  { %p1556_p13 = por %p1555_p12, %p1554_p11 }
  0x21   :  { %p1557_p0 = pnand %p1556_p13, %p1550_p10 }
  0x23   :  { %1560 = shalt.err (!%p1557_p0)
}
  0x24   :  { %50 = dma.hbm_to_vmem [thread:$0]  %s1850_s3, 256, %s45_s7, [#allocation6], %s1588_s21, %s1588_s21, %s1589_s22  }
  0x25   :  { %1581 = dma.done.wait [#allocation3], 256  }
  0x26   :  { %1582 = vsyncadd [#allocation3], 4294967040 }
  0x27   :  { %1583 = dma.done.wait [#allocation6], 512  }
  0x28   :  { %1584 = vsyncadd [#allocation6], 4294966784  ;;  %v1594_v0 = vmov 0.0   ;;  %vm1595_vm0 = vmmov 0   ;;  %v1467_v1 = vld [vmem:[#allocation5 + $0x8] sm:$0xff]   ;;  %v1468_v2 = vld [vmem:[#allocation5] sm:$0xff]  }
  0x29   :  { %1319 = vmatprep.subr.bf16.mxu0 %v1594_v0  ;;  %1323 = vmatprep.mubr.msk.bf16.mxu0 %vm1595_vm0, %v1594_v0  ;;  %v63_v3 = vld [vmem:[#allocation2] sm:$0xff]  ;;  %v64_v4 = vld [vmem:[#allocation2 + $0x8] sm:$0xff]  ;;  %vm89_vm1 = vcmask 261120   ;;  %s1596_s11 = smov 96   ;;  %vm143_vm2 = vcmask 64512   ;;  %vm268_vm3 = vcmask 1043456  }
  0x2a   :  { %1327 = vmatprep.subr.bf16.mxu1 %v1594_v0  ;;  %1329 = vmatprep.mubr.msk.bf16.mxu1 %vm1595_vm0, %v1594_v0  ;;  %v65_v5 = vpack.c.bf16 %v64_v4, %v63_v3  ;;  %v1251_v6 = vld [vmem:[%s1849_s2] ss:$0 sm:$0xff]  ;;  %s1597_s2 = smov 88   ;;  %s1598_s12 = smov 120  }
  0x2b   :  { %1320 = vmatpush3.bf16.msra.mxu0 %v1467_v1  ;;  %s1599_s13 = smov 56   ;;  %s1600_s14 = smov 112  }
  0x2c   :  { %1321 = vmatprep.subr.bf16.mxu0 %v1594_v0  ;;  %s1601_s15 = smov 80   ;;  %s1602_s16 = smov 48  }
  0x2d   :  { %s1603_s17 = smov 72   ;;  %s1604_s18 = smov 104  }
  0x2e   :  { %s1605_s19 = smov 40   ;;  %s1606_s22 = smov [#allocation8]  }
  0x2f   :  { %1322 = vmatpush3.bf16.msra.mxu0 %v1468_v2  ;;  %s1238_s23 = sshll.u32 %s1606_s22, 4  ;;  %s1239_s23 = int_to_ptr.vmem [resolvable:$true] %s1238_s23 }
  0x30   :  { %1333 = vmatprep.subr.bf16.mxu0 %v1594_v0  ;;  %s1561_s24 = scalar_lea.vmem %s1239_s23, 256  ;;  %p1566_p2 = scmp.lt.s32.totalorder %s1239_s23, %s1239_s23 }
  0x31   :  { %p1562_p1 = scmp.ne.s32.totalorder %s1239_s23, %s1561_s24  ;;  %p1567_p3 = scmp.lt.s32.totalorder %s1561_s24, %s1561_s24 }
  0x32   :  { %1324 = vmatmul.mubr.msk.bf16.vlgmr.msra.gmra.mxu0 %vm89_vm1, %v65_v5 }
  0x33   :  { %1335 = vmatprep.mubr.msk.bf16.mxu0 %vm1595_vm0, %v1594_v0  ;;  %p1568_p4 = por %p1567_p3, %p1566_p2 }
  0x35   :  { %p1569_p5 = pnand %p1568_p4, %p1562_p1 }
  0xf2   :  { %v127_v7 = vpop.f32.mrf.mxu0 }
  0xf3   :  { %v128_v8 = vadd.f32 %v1251_v6, %v127_v7 }
  0xf4   :  { %v1325_v9 = vpop.f32.mrf.mxu0 }
  0xf5   :  { %v1667_v10 = vpack.c.bf16 %v128_v8, %v128_v8  ;;  %v134_v17 = vmul.f32 0.17677669, %v128_v8 }
  0xf6   :  { %v130_v11 = vpop.f32.mrf.mxu0 }
  0xf7   :  { %v131_v12 = vadd.f32 %v1251_v6, %v130_v11  ;;  %141 = vrot.lane.b32.xlu0 %v1667_v10, %s1596_s11  ;;  %v1676_v20 = vpack.c.bf16 %v134_v17, %v134_v17 }
  0xf8   :  { %v1326_v13 = vpop.f32.mrf.mxu0 }
  0xf9   :  { %v1670_v14 = vpack.c.bf16 %v131_v12, %v131_v12  ;;  %v135_v21 = vmul.f32 0.17677669, %v131_v12 }
  0xfb   :  { %191 = vrot.lane.b32.xlu0 %v1670_v14, %s1596_s11  ;;  %v1683_v22 = vpack.c.bf16 %v135_v21, %v135_v21 }
 0x169   :  { %v142_v15 = vpop.permute.xlu0 %141 }
 0x16a   :  { %v148_v16 = vsel %vm143_vm2, %v142_v15, 0 }
 0x16b   :  { %1328 = vmatpush3.bf16.xpose.msra.mxu1 %v148_v16 }
 0x16c   :  { %1339 = vmatprep.subr.bf16.mxu1 %v1594_v0 }
 0x16d   :  { %v192_v18 = vpop.permute.xlu0 %191 }
 0x16e   :  { %v197_v19 = vsel %vm143_vm2, %v192_v18, 0 }
 0x16f   :  { %1334 = vmatpush3.bf16.xpose.msra.mxu0 %v197_v19 }
 0x170   :  { %1345 = vmatprep.subr.bf16.mxu0 %v1594_v0 }
 0x172   :  { %1330 = vmatmul.mubr.msk.bf16.vlgmr.msra.gmra.mxu1 %vm143_vm2, %v1676_v20 }
 0x173   :  { %1341 = vmatprep.mubr.msk.bf16.mxu1 %vm1595_vm0, %v1594_v0 }
 0x176   :  { %1336 = vmatmul.mubr.msk.bf16.vlgmr.msra.gmra.mxu0 %vm143_vm2, %v1683_v22 }
 0x177   :  { %1347 = vmatprep.mubr.msk.bf16.mxu0 %vm1595_vm0, %v1594_v0 }
 0x232   :  { %v184_v23 = vpop.f32.mrf.mxu1 }
 0x233   :  { %v239_v24 = vsel %vm143_vm2, %v184_v23, -inf }
 0x234   :  { %240 = vmax.xlane.f32.xlu1 %v239_v24  ;;  %v1331_v25 = vpop.f32.mrf.mxu1 }
 0x236   :  { %v187_v26 = vpop.f32.mrf.mxu1  ;;  %v233_v27 = vpop.f32.mrf.mxu0 }
 0x237   :  { %v242_v28 = vsel %vm143_vm2, %v233_v27, -inf }
 0x238   :  { %v1332_v29 = vpop.f32.mrf.mxu1  ;;  %243 = vmax.xlane.f32.xlu1 %v242_v28  ;;  %v1337_v30 = vpop.f32.mrf.mxu0 }
 0x23a   :  { %v236_v31 = vpop.f32.mrf.mxu0 }
 0x23c   :  { %v1338_v32 = vpop.f32.mrf.mxu0 }
 0x249   :  { %263 = vrot.lane.b32.xlu1 %v1667_v10, %s1588_s21 }
 0x24d   :  { %312 = vrot.lane.b32.xlu1 %v1670_v14, %s1588_s21 }
 0x251   :  { %365 = vrot.lane.b32.xlu1 %v1667_v10, %s1597_s2 }
 0x2bd   :  { %v241_v33 = vpop.xlane.xlu1 %240 }
 0x2be   :  { %v245_v34 = vsub.f32 %v184_v23, %v241_v33 }
 0x2c0   :  { %v247_v35 = vmul.f32 1.442695, %v245_v34 }
 0x2c1   :  { %v244_v36 = vpop.xlane.xlu1 %243 }
 0x2c2   :  { %1469 = vpow2.f32 %v247_v35  ;;  %v246_v37 = vsub.f32 %v233_v27, %v244_v36 }
 0x2c4   :  { %v249_v38 = vmul.f32 1.442695, %v246_v37 }
 0x2c5   :  { %v264_v39 = vpop.permute.xlu1 %263 }
 0x2c6   :  { %1471 = vpow2.f32 %v249_v38  ;;  %v270_v40 = vsel %vm268_vm3, %v264_v39, 0 }
 0x2c7   :  { %1340 = vmatpush3.bf16.msra.mxu1 %v270_v40 }
 0x2c8   :  { %1351 = vmatprep.subr.bf16.mxu1 %v1594_v0 }
 0x2c9   :  { %v313_v41 = vpop.permute.xlu1 %312 }
 0x2ca   :  { %v318_v42 = vsel %vm268_vm3, %v313_v41, 0  ;;  %v361_v41 = vld [vmem:[#allocation7] sm:$0xf] }
 0x2cb   :  { %1346 = vmatpush3.bf16.msra.mxu0 %v318_v42 }
 0x2cc   :  { %1357 = vmatprep.subr.bf16.mxu0 %v1594_v0 }
 0x2cd   :  { %v366_v47 = vpop.permute.xlu1 %365 }
 0x2ce   :  { %v371_v54 = vsel %vm143_vm2, %v366_v47, 0 }
 0x2cf   :  { %v1470_v43 = vpop.eup %1469 }
 0x2d0   :  { %v251_v44 = vsel %vm143_vm2, %v1470_v43, 0.0 }
 0x2d1   :  { %252 = vadd.xlane.f32.xlu0 %v251_v44  ;;  %v637_v44 = vsel %vm268_vm3, %v361_v41, 0 }
 0x2d3   :  { %v1472_v45 = vpop.eup %1471 }
 0x2d4   :  { %v254_v46 = vsel %vm143_vm2, %v1472_v45, 0.0 }
 0x2d5   :  { %255 = vadd.xlane.f32.xlu1 %v254_v46 }
 0x2e6   :  { %416 = vrot.lane.b32.xlu1 %v1670_v14, %s1597_s2 }
 0x2e7   :  { %363 = vrot.lane.b32.xlu0 %v1676_v20, %s1598_s12 }
 0x2ea   :  { %414 = vrot.lane.b32.xlu1 %v1683_v22, %s1598_s12 }
 0x35a   :  { %v253_v48 = vpop.xlane.xlu0 %252 }
 0x35b   :  { %1473 = vrcp.f32 %v253_v48 }
 0x35e   :  { %v256_v49 = vpop.xlane.xlu1 %255  ;;  %v364_v59 = vpop.permute.xlu0 %363 }
 0x35f   :  { %1475 = vrcp.f32 %v256_v49  ;;  %v585_v49 = vld [vmem:[#allocation7 + $0x4] sm:$0xf] }
 0x362   :  { %v417_v56 = vpop.permute.xlu1 %416 }
 0x363   :  { %v422_v58 = vsel %vm143_vm2, %v417_v56, 0 }
 0x366   :  { %v415_v60 = vpop.permute.xlu1 %414 }
 0x368   :  { %v1474_v50 = vpop.eup %1473 }
 0x369   :  { %v259_v51 = vmul.f32 %v1474_v50, %v1470_v43  ;;  %v590_v50 = vsel %vm268_vm3, %v585_v49, 0 }
 0x36b   :  { %v261_v52 = vpack.c.bf16 %v259_v51, %v259_v51 }
 0x36c   :  { %v1476_v53 = vpop.eup %1475 }
 0x36d   :  { %1342 = vmatmul.mubr.msk.bf16.vlgmr.msra.gmra.mxu1 %vm143_vm2, %v261_v52  ;;  %v260_v55 = vmul.f32 %v1476_v53, %v1472_v45 }
 0x36e   :  { %1352 = vmatpush3.bf16.xpose.msra.mxu1 %v371_v54  ;;  %1353 = vmatprep.mubr.msk.bf16.mxu1 %vm1595_vm0, %v1594_v0 }
 0x36f   :  { %v262_v57 = vpack.c.bf16 %v260_v55, %v260_v55  ;;  %1363 = vmatprep.subr.bf16.mxu1 %v1594_v0 }
 0x371   :  { %1348 = vmatmul.mubr.msk.bf16.vlgmr.msra.gmra.mxu0 %vm143_vm2, %v262_v57 }
 0x372   :  { %1358 = vmatpush3.bf16.xpose.msra.mxu0 %v422_v58  ;;  %1359 = vmatprep.mubr.msk.bf16.mxu0 %vm1595_vm0, %v1594_v0 }
 0x373   :  { %1369 = vmatprep.subr.bf16.mxu0 %v1594_v0 }
 0x375   :  { %1354 = vmatmul.mubr.msk.bf16.vlgmr.msra.gmra.mxu1 %vm143_vm2, %v364_v59 }
 0x376   :  { %1365 = vmatprep.mubr.msk.bf16.mxu1 %vm1595_vm0, %v1594_v0 }
 0x379   :  { %1360 = vmatmul.mubr.msk.bf16.vlgmr.msra.gmra.mxu0 %vm143_vm2, %v415_v60 }
 0x37a   :  { %1371 = vmatprep.mubr.msk.bf16.mxu0 %vm1595_vm0, %v1594_v0 }
 0x42d   :  { %v1721_v61 = vpop.f32.mrf.mxu1 }
 0x42f   :  { %v1343_v62 = vpop.f32.mrf.mxu1 }
 0x431   :  { %v309_v63 = vpop.f32.mrf.mxu1  ;;  %v1723_v1 = vpop.f32.mrf.mxu0 }
 0x432   :  { %v360_v2 = vpack.c.bf16 %v1723_v1, %v1721_v61 }
 0x433   :  { %v1344_v3 = vpop.f32.mrf.mxu1  ;;  %v1349_v4 = vpop.f32.mrf.mxu0 }
 0x435   :  { %v357_v5 = vpop.f32.mrf.mxu0  ;;  %v407_v6 = vpop.f32.mrf.mxu1 }
 0x436   :  { %v464_v7 = vsel %vm143_vm2, %v407_v6, -inf }
 0x437   :  { %465 = vmax.xlane.f32.xlu1 %v464_v7  ;;  %v1350_v8 = vpop.f32.mrf.mxu0  ;;  %v1355_v9 = vpop.f32.mrf.mxu1 }
 0x439   :  { %v410_v11 = vpop.f32.mrf.mxu1  ;;  %v458_v12 = vpop.f32.mrf.mxu0 }
 0x43a   :  { %v467_v13 = vsel %vm143_vm2, %v458_v12, -inf }
 0x43b   :  { %v1356_v15 = vpop.f32.mrf.mxu1  ;;  %468 = vmax.xlane.f32.xlu0 %v467_v13  ;;  %v1361_v16 = vpop.f32.mrf.mxu0 }
 0x43d   :  { %v461_v17 = vpop.f32.mrf.mxu0 }
 0x43f   :  { %v1362_v18 = vpop.f32.mrf.mxu0 }
 0x451   :  { %536 = vrot.lane.b32.xlu0 %v1670_v14, %s1599_s13 }
 0x455   :  { %680 = vrot.lane.b32.xlu0 %v1676_v20, %s1600_s14 }
 0x4c0   :  { %v466_v19 = vpop.xlane.xlu1 %465 }
 0x4c1   :  { %v470_v21 = vsub.f32 %v407_v6, %v466_v19 }
 0x4c3   :  { %v472_v23 = vmul.f32 1.442695, %v470_v21 }
 0x4c4   :  { %v469_v24 = vpop.xlane.xlu0 %468 }
 0x4c5   :  { %1477 = vpow2.f32 %v472_v23  ;;  %v471_v25 = vsub.f32 %v458_v12, %v469_v24 }
 0x4c7   :  { %v474_v26 = vmul.f32 1.442695, %v471_v25 }
 0x4c8   :  { %v537_v27 = vpop.permute.xlu0 %536 }
 0x4c9   :  { %1479 = vpow2.f32 %v474_v26  ;;  %v542_v28 = vsel %vm268_vm3, %v537_v27, 0 }
 0x4ca   :  { %1370 = vmatpush3.bf16.msra.mxu0 %v542_v28 }
 0x4cb   :  { %1381 = vmatprep.subr.bf16.mxu0 %v1594_v0 }
 0x4cc   :  { %v681_v62 = vpop.permute.xlu0 %680 }
 0x4d2   :  { %v1478_v29 = vpop.eup %1477 }
 0x4d3   :  { %v476_v30 = vsel %vm143_vm2, %v1478_v29, 0.0 }
 0x4d4   :  { %477 = vadd.xlane.f32.xlu1 %v476_v30 }
 0x4d6   :  { %v1480_v31 = vpop.eup %1479 }
 0x4d7   :  { %v479_v32 = vsel %vm143_vm2, %v1480_v31, 0.0 }
 0x4d8   :  { %480 = vadd.xlane.f32.xlu1 %v479_v32 }
 0x4e9   :  { %488 = vrot.lane.b32.xlu1 %v1667_v10, %s1599_s13 }
 0x4ed   :  { %682 = vrot.lane.b32.xlu1 %v1667_v10, %s1601_s15 }
 0x4f1   :  { %732 = vrot.lane.b32.xlu1 %v1670_v14, %s1601_s15 }
 0x4f5   :  { %730 = vrot.lane.b32.xlu1 %v1683_v22, %s1600_s14 }
 0x55d   :  { %v478_v33 = vpop.xlane.xlu1 %477 }
 0x55e   :  { %1481 = vrcp.f32 %v478_v33 }
 0x561   :  { %v481_v34 = vpop.xlane.xlu1 %480 }
 0x562   :  { %1483 = vrcp.f32 %v481_v34 }
 0x565   :  { %v489_v35 = vpop.permute.xlu1 %488 }
 0x566   :  { %v494_v36 = vsel %vm268_vm3, %v489_v35, 0 }
 0x567   :  { %1364 = vmatpush3.bf16.msra.mxu1 %v494_v36 }
 0x568   :  { %1375 = vmatprep.subr.bf16.mxu1 %v1594_v0 }
 0x569   :  { %v683_v45 = vpop.permute.xlu1 %682 }
 0x56a   :  { %v688_v58 = vsel %vm143_vm2, %v683_v45, 0 }
 0x56b   :  { %v1482_v37 = vpop.eup %1481 }
 0x56c   :  { %v484_v38 = vmul.f32 %v1482_v37, %v1478_v29 }
 0x56d   :  { %v733_v46 = vpop.permute.xlu1 %732 }
 0x56e   :  { %v486_v39 = vpack.c.bf16 %v484_v38, %v484_v38  ;;  %v738_v47 = vsel %vm143_vm2, %v733_v46, 0 }
 0x56f   :  { %v1484_v40 = vpop.eup %1483 }
 0x570   :  { %1366 = vmatmul.mubr.msk.bf16.vlgmr.msra.gmra.mxu1 %vm143_vm2, %v486_v39  ;;  %v485_v42 = vmul.f32 %v1484_v40, %v1480_v31 }
 0x571   :  { %1377 = vmatprep.mubr.msk.bf16.mxu1 %vm1595_vm0, %v1594_v0  ;;  %v731_v48 = vpop.permute.xlu1 %730  ;;  %1376 = vmatpush3.bf16.msra.mxu1 %v590_v50 }
 0x572   :  { %v487_v43 = vpack.c.bf16 %v485_v42, %v485_v42  ;;  %1387 = vmatprep.subr.bf16.mxu1 %v1594_v0 }
 0x574   :  { %1372 = vmatmul.mubr.msk.bf16.vlgmr.msra.gmra.mxu0 %vm143_vm2, %v487_v43 }
 0x575   :  { %1382 = vmatpush3.bf16.msra.mxu0 %v637_v44  ;;  %1383 = vmatprep.mubr.msk.bf16.mxu0 %vm1595_vm0, %v1594_v0  ;;  %v901_v44 = vld [vmem:[#allocation7 + $0x8] sm:$0xf] }
 0x576   :  { %1393 = vmatprep.subr.bf16.mxu0 %v1594_v0  ;;  %v906_v45 = vsel %vm268_vm3, %v901_v44, 0 }
 0x57c   :  { %1384 = vmatmul.mubr.msk.bf16.vlgmr.msra.gmra.mxu0 %vm143_vm2, %v360_v2 }
 0x57d   :  { %1394 = vmatpush3.bf16.xpose.msra.mxu0 %v738_v47  ;;  %1395 = vmatprep.mubr.msk.bf16.mxu0 %vm1595_vm0, %v1594_v0 }
 0x57e   :  { %1405 = vmatprep.subr.bf16.mxu0 %v1594_v0 }
 0x584   :  { %1396 = vmatmul.mubr.msk.bf16.vlgmr.msra.gmra.mxu0 %vm143_vm2, %v731_v48 }
 0x585   :  { %1407 = vmatprep.mubr.msk.bf16.mxu0 %vm1595_vm0, %v1594_v0 }
 0x630   :  { %v530_v51 = vpop.f32.mrf.mxu1 }
 0x632   :  { %v1367_v52 = vpop.f32.mrf.mxu1 }
 0x634   :  { %v533_v53 = vpop.f32.mrf.mxu1  ;;  %v578_v54 = vpop.f32.mrf.mxu0 }
 0x635   :  { %v584_v55 = vpack.c.bf16 %v578_v54, %v530_v51 }
 0x636   :  { %v1368_v56 = vpop.f32.mrf.mxu1  ;;  %v1373_v57 = vpop.f32.mrf.mxu0 }
 0x637   :  { %1378 = vmatmul.mubr.msk.bf16.vlgmr.msra.gmra.mxu1 %vm143_vm2, %v584_v55 }
 0x638   :  { %1388 = vmatpush3.bf16.xpose.msra.mxu1 %v688_v58  ;;  %v581_v59 = vpop.f32.mrf.mxu0  ;;  %1389 = vmatprep.mubr.msk.bf16.mxu1 %vm1595_vm0, %v1594_v0 }
 0x639   :  { %1399 = vmatprep.subr.bf16.mxu1 %v1594_v0 }
 0x63a   :  { %v1374_v60 = vpop.f32.mrf.mxu0 }
 0x63c   :  { %v1767_v61 = vpop.f32.mrf.mxu0 }
 0x63e   :  { %v1385_v63 = vpop.f32.mrf.mxu0 }
 0x63f   :  { %1390 = vmatmul.mubr.msk.bf16.vlgmr.msra.gmra.mxu1 %vm143_vm2, %v681_v62 }
 0x640   :  { %v1770_v1 = vpop.f32.mrf.mxu0  ;;  %1401 = vmatprep.mubr.msk.bf16.mxu1 %vm1595_vm0, %v1594_v0 }
 0x642   :  { %v1386_v2 = vpop.f32.mrf.mxu0 }
 0x644   :  { %v774_v3 = vpop.f32.mrf.mxu0 }
 0x645   :  { %v783_v4 = vsel %vm143_vm2, %v774_v3, -inf }
 0x646   :  { %784 = vmax.xlane.f32.xlu1 %v783_v4  ;;  %v1397_v5 = vpop.f32.mrf.mxu0 }
 0x648   :  { %v777_v6 = vpop.f32.mrf.mxu0 }
 0x64a   :  { %v1398_v7 = vpop.f32.mrf.mxu0 }
 0x657   :  { %804 = vrot.lane.b32.xlu1 %v1667_v10, %s1602_s16 }
 0x65b   :  { %953 = vrot.lane.b32.xlu1 %v1667_v10, %s1603_s17 }
 0x65f   :  { %1003 = vrot.lane.b32.xlu1 %v1670_v14, %s1603_s17 }
 0x663   :  { %1001 = vrot.lane.b32.xlu1 %v1683_v22, %s1604_s18 }
 0x6cf   :  { %v785_v8 = vpop.xlane.xlu1 %784 }
 0x6d0   :  { %v787_v12 = vsub.f32 %v774_v3, %v785_v8 }
 0x6d2   :  { %v790_v13 = vmul.f32 1.442695, %v787_v12 }
 0x6d3   :  { %v805_v9 = vpop.permute.xlu1 %804 }
 0x6d4   :  { %v810_v11 = vsel %vm268_vm3, %v805_v9, 0  ;;  %1485 = vpow2.f32 %v790_v13 }
 0x6d5   :  { %1400 = vmatpush3.bf16.msra.mxu1 %v810_v11 }
 0x6d6   :  { %1411 = vmatprep.subr.bf16.mxu1 %v1594_v0 }
 0x6d7   :  { %v954_v38 = vpop.permute.xlu1 %953 }
 0x6d8   :  { %v959_v40 = vsel %vm143_vm2, %v954_v38, 0 }
 0x6db   :  { %v1004_v51 = vpop.permute.xlu1 %1003 }
 0x6dc   :  { %v1009_v58 = vsel %vm143_vm2, %v1004_v51, 0 }
 0x6df   :  { %v1002_v63 = vpop.permute.xlu1 %1001 }
 0x6e1   :  { %v1486_v22 = vpop.eup %1485 }
 0x6e2   :  { %v795_v25 = vsel %vm143_vm2, %v1486_v22, 0.0 }
 0x6f7   :  { %v1783_v15 = vpop.f32.mrf.mxu1 }
 0x6f8   :  { %v674_v7 = vadd.f32 %v1767_v61, %v1783_v15 }
 0x6f9   :  { %v1379_v16 = vpop.f32.mrf.mxu1 }
 0x6fb   :  { %v1785_v17 = vpop.f32.mrf.mxu1 }
 0x6fc   :  { %v677_v12 = vadd.f32 %v1770_v1, %v1785_v17 }
 0x6fd   :  { %v1380_v18 = vpop.f32.mrf.mxu1 }
 0x6ff   :  { %v724_v19 = vpop.f32.mrf.mxu1 }
 0x700   :  { %v780_v21 = vsel %vm143_vm2, %v724_v19, -inf }
 0x701   :  { %781 = vmax.xlane.f32.xlu0 %v780_v21  ;;  %v1391_v23 = vpop.f32.mrf.mxu1 }
 0x703   :  { %v727_v24 = vpop.f32.mrf.mxu1 }
 0x705   :  { %v1392_v26 = vpop.f32.mrf.mxu1  ;;  %796 = vadd.xlane.f32.xlu0 %v795_v25 }
 0x78a   :  { %v782_v27 = vpop.xlane.xlu0 %781 }
 0x78b   :  { %v786_v28 = vsub.f32 %v724_v19, %v782_v27 }
 0x78d   :  { %v788_v29 = vmul.f32 1.442695, %v786_v28 }
 0x78e   :  { %v797_v32 = vpop.xlane.xlu0 %796 }
 0x78f   :  { %1487 = vpow2.f32 %v788_v29 }
 0x790   :  { %1489 = vrcp.f32 %v797_v32 }
 0x79c   :  { %v1488_v30 = vpop.eup %1487 }
 0x79d   :  { %v792_v31 = vsel %vm143_vm2, %v1488_v30, 0.0  ;;  %v1490_v33 = vpop.eup %1489 }
 0x79e   :  { %793 = vadd.xlane.f32.xlu0 %v792_v31  ;;  %v801_v35 = vmul.f32 %v1490_v33, %v1486_v22  ;;  %v1172_v31 = vld [vmem:[#allocation7 + $0xc] sm:$0xf] }
 0x79f   :  { %v1177_v32 = vsel %vm268_vm3, %v1172_v31, 0 }
 0x7a0   :  { %v803_v39 = vpack.c.bf16 %v801_v35, %v801_v35 }
 0x7b4   :  { %852 = vrot.lane.b32.xlu0 %v1670_v14, %s1602_s16 }
 0x7b8   :  { %951 = vrot.lane.b32.xlu0 %v1676_v20, %s1604_s18 }
 0x827   :  { %v794_v34 = vpop.xlane.xlu0 %793 }
 0x828   :  { %1491 = vrcp.f32 %v794_v34 }
 0x82b   :  { %v853_v36 = vpop.permute.xlu0 %852 }
 0x82c   :  { %v858_v37 = vsel %vm268_vm3, %v853_v36, 0 }
 0x82d   :  { %1406 = vmatpush3.bf16.msra.mxu0 %v858_v37 }
 0x82e   :  { %1417 = vmatprep.subr.bf16.mxu0 %v1594_v0 }
 0x82f   :  { %v952_v42 = vpop.permute.xlu0 %951 }
 0x830   :  { %1408 = vmatmul.mubr.msk.bf16.vlgmr.msra.gmra.mxu0 %vm143_vm2, %v803_v39 }
 0x831   :  { %1418 = vmatpush3.bf16.xpose.msra.mxu0 %v959_v40  ;;  %1419 = vmatprep.mubr.msk.bf16.mxu0 %vm1595_vm0, %v1594_v0 }
 0x832   :  { %1429 = vmatprep.subr.bf16.mxu0 %v1594_v0 }
 0x835   :  { %v1492_v20 = vpop.eup %1491 }
 0x836   :  { %v800_v41 = vmul.f32 %v1492_v20, %v1488_v30 }
 0x838   :  { %1420 = vmatmul.mubr.msk.bf16.vlgmr.msra.gmra.mxu0 %vm143_vm2, %v952_v42  ;;  %v802_v43 = vpack.c.bf16 %v800_v41, %v800_v41 }
 0x839   :  { %1431 = vmatprep.mubr.msk.bf16.mxu0 %vm1595_vm0, %v1594_v0 }
 0x83a   :  { %1402 = vmatmul.mubr.msk.bf16.vlgmr.msra.gmra.mxu1 %vm143_vm2, %v802_v43 }
 0x83b   :  { %1413 = vmatprep.mubr.msk.bf16.mxu1 %vm1595_vm0, %v1594_v0  ;;  %1412 = vmatpush3.bf16.msra.mxu1 %v906_v45 }
 0x83c   :  { %1423 = vmatprep.subr.bf16.mxu1 %v1594_v0 }
 0x8f0   :  { %v894_v46 = vpop.f32.mrf.mxu0 }
 0x8f2   :  { %v1409_v47 = vpop.f32.mrf.mxu0 }
 0x8f4   :  { %v897_v48 = vpop.f32.mrf.mxu0 }
 0x8f6   :  { %v1410_v49 = vpop.f32.mrf.mxu0 }
 0x8f8   :  { %v995_v50 = vpop.f32.mrf.mxu0 }
 0x8f9   :  { %v1051_v52 = vsel %vm143_vm2, %v995_v50, -inf }
 0x8fa   :  { %v846_v53 = vpop.f32.mrf.mxu1  ;;  %1052 = vmax.xlane.f32.xlu0 %v1051_v52  ;;  %v1421_v54 = vpop.f32.mrf.mxu0 }
 0x8fb   :  { %v900_v55 = vpack.c.bf16 %v894_v46, %v846_v53  ;;  %v1275_v46 = vld [vmem:[%s1851_s4] ss:$0 sm:$0xff] }
 0x8fc   :  { %v1403_v56 = vpop.f32.mrf.mxu1  ;;  %v998_v57 = vpop.f32.mrf.mxu0 }
 0x8fd   :  { %1414 = vmatmul.mubr.msk.bf16.vlgmr.msra.gmra.mxu1 %vm143_vm2, %v900_v55 }
 0x8fe   :  { %1424 = vmatpush3.bf16.xpose.msra.mxu1 %v1009_v58  ;;  %v849_v59 = vpop.f32.mrf.mxu1  ;;  %v1422_v60 = vpop.f32.mrf.mxu0  ;;  %1425 = vmatprep.mubr.msk.bf16.mxu1 %vm1595_vm0, %v1594_v0 }
 0x8ff   :  { %1435 = vmatprep.subr.bf16.mxu1 %v1594_v0 }
 0x900   :  { %v1404_v62 = vpop.f32.mrf.mxu1 }
 0x905   :  { %1426 = vmatmul.mubr.msk.bf16.vlgmr.msra.gmra.mxu1 %vm143_vm2, %v1002_v63 }
 0x906   :  { %1437 = vmatprep.mubr.msk.bf16.mxu1 %vm1595_vm0, %v1594_v0 }
 0x983   :  { %v1053_v2 = vpop.xlane.xlu0 %1052 }
 0x984   :  { %v1057_v3 = vsub.f32 %v995_v50, %v1053_v2 }
 0x986   :  { %v1059_v4 = vmul.f32 1.442695, %v1057_v3 }
 0x988   :  { %1493 = vpow2.f32 %v1059_v4 }
 0x995   :  { %v1494_v5 = vpop.eup %1493 }
 0x996   :  { %v1063_v6 = vsel %vm143_vm2, %v1494_v5, 0.0 }
 0x997   :  { %1064 = vadd.xlane.f32.xlu0 %v1063_v6 }
 0x9bd   :  { %v942_v8 = vpop.f32.mrf.mxu1 }
 0x9be   :  { %v949_v9 = vadd.f32 %v942_v8, %v674_v7 }
 0x9bf   :  { %v1415_v11 = vpop.f32.mrf.mxu1 }
 0x9c1   :  { %v945_v13 = vpop.f32.mrf.mxu1 }
 0x9c2   :  { %v950_v16 = vadd.f32 %v945_v13, %v677_v12 }
 0x9c3   :  { %v1416_v18 = vpop.f32.mrf.mxu1 }
 0x9c5   :  { %v1045_v19 = vpop.f32.mrf.mxu1 }
 0x9c6   :  { %v1054_v21 = vsel %vm143_vm2, %v1045_v19, -inf }
 0x9c7   :  { %1055 = vmax.xlane.f32.xlu1 %v1054_v21  ;;  %v1427_v22 = vpop.f32.mrf.mxu1 }
 0x9c9   :  { %v1048_v23 = vpop.f32.mrf.mxu1 }
 0x9cb   :  { %v1428_v24 = vpop.f32.mrf.mxu1 }
 0x9d8   :  { %1075 = vrot.lane.b32.xlu1 %v1667_v10, %s1605_s19 }
 0xa20   :  { %v1065_v61 = vpop.xlane.xlu0 %1064 }
 0xa21   :  { %1495 = vrcp.f32 %v1065_v61 }
 0xa2e   :  { %v1496_v15 = vpop.eup %1495 }
 0xa2f   :  { %v1071_v1 = vmul.f32 %v1496_v15, %v1494_v5 }
 0xa31   :  { %v1073_v29 = vpack.c.bf16 %v1071_v1, %v1071_v1 }
 0xa50   :  { %v1056_v25 = vpop.xlane.xlu1 %1055 }
 0xa51   :  { %v1058_v26 = vsub.f32 %v1045_v19, %v1056_v25 }
 0xa53   :  { %v1061_v27 = vmul.f32 1.442695, %v1058_v26 }
 0xa54   :  { %v1076_v17 = vpop.permute.xlu1 %1075 }
 0xa55   :  { %1497 = vpow2.f32 %v1061_v27  ;;  %v1081_v28 = vsel %vm268_vm3, %v1076_v17, 0 }
 0xa56   :  { %1430 = vmatpush3.bf16.msra.mxu0 %v1081_v28 }
 0xa57   :  { %1441 = vmatprep.subr.bf16.mxu0 %v1594_v0 }
 0xa59   :  { %1432 = vmatmul.mubr.msk.bf16.vlgmr.msra.gmra.mxu0 %vm143_vm2, %v1073_v29 }
 0xa5a   :  { %1443 = vmatprep.mubr.msk.bf16.mxu0 %vm1595_vm0, %v1594_v0  ;;  %1442 = vmatpush3.bf16.msra.mxu0 %v1177_v32 }
 0xa62   :  { %v1498_v10 = vpop.eup %1497 }
 0xa63   :  { %v1066_v30 = vsel %vm143_vm2, %v1498_v10, 0.0 }
 0xa64   :  { %1067 = vadd.xlane.f32.xlu0 %v1066_v30 }
 0xa7a   :  { %1123 = vrot.lane.b32.xlu0 %v1670_v14, %s1605_s19 }
 0xaed   :  { %v1068_v33 = vpop.xlane.xlu0 %1067 }
 0xaee   :  { %1499 = vrcp.f32 %v1068_v33 }
 0xaf1   :  { %v1124_v34 = vpop.permute.xlu0 %1123 }
 0xaf2   :  { %v1129_v35 = vsel %vm268_vm3, %v1124_v34, 0 }
 0xaf3   :  { %1436 = vmatpush3.bf16.msra.mxu1 %v1129_v35 }
 0xafb   :  { %v1500_v36 = vpop.eup %1499 }
 0xafc   :  { %v1072_v37 = vmul.f32 %v1500_v36, %v1498_v10 }
 0xafe   :  { %v1074_v38 = vpack.c.bf16 %v1072_v37, %v1072_v37 }
 0xb00   :  { %1438 = vmatmul.mubr.msk.bf16.vlgmr.msra.gmra.mxu1 %vm143_vm2, %v1074_v38 }
 0xb19   :  { %v1117_v0 = vpop.f32.mrf.mxu0 }
 0xb1b   :  { %v1433_v39 = vpop.f32.mrf.mxu0 }
 0xb1d   :  { %v1120_v40 = vpop.f32.mrf.mxu0 }
 0xb1f   :  { %v1434_v20 = vpop.f32.mrf.mxu0 }
 0xbc0   :  { %v1165_v14 = vpop.f32.mrf.mxu1 }
 0xbc1   :  { %v1171_v41 = vpack.c.bf16 %v1165_v14, %v1117_v0 }
 0xbc2   :  { %v1439_v42 = vpop.f32.mrf.mxu1 }
 0xbc3   :  { %1444 = vmatmul.mubr.msk.bf16.vlgmr.msra.gmra.mxu0 %vm143_vm2, %v1171_v41 }
 0xbc4   :  { %v1168_v43 = vpop.f32.mrf.mxu1 }
 0xbc6   :  { %v1440_v44 = vpop.f32.mrf.mxu1 }
 0xc83   :  { %v1213_v45 = vpop.f32.mrf.mxu0 }
 0xc84   :  { %v1220_v47 = vadd.f32 %v1213_v45, %v949_v9 }
 0xc85   :  { %v1445_v48 = vpop.f32.mrf.mxu0 }
 0xc86   :  { %v1229_v49 = vadd.f32 %v1275_v46, %v1220_v47 }
 0xc87   :  { %v1216_v50 = vpop.f32.mrf.mxu0 }
 0xc88   :  { %1231 = vst.msk [vmem:[#allocation8] sm:$0xff] %vm89_vm1, %v1229_v49  ;;  %v1221_v51 = vadd.f32 %v1216_v50, %v950_v16 }
 0xc89   :  { %v1446_v52 = vpop.f32.mrf.mxu0 }
 0xc8a   :  { %v1230_v53 = vadd.f32 %v1275_v46, %v1221_v51 }
 0xc8c   :  { %1232 = vst.msk [vmem:[#allocation8 + $0x8] sm:$0xff] %vm89_vm1, %v1230_v53 }
 0xc8d   :  { %1572 = shalt.err (!%p1569_p5)
}
 0xc8e   :  { %1244 = dma.vmem_to_hbm [thread:$0]  %s1239_s23, 256, %s1852_s5, [#allocation4], %s1591_s28, %s1591_s28, %s1592_s29  }
 0xc8f   :  { %1585 = dma.done.wait [#allocation4], 256  }
 0xc90   :  { %1586 = vsyncadd [#allocation4], 4294967040 }
 0xc91   :  { %1248 = vsyncpa [#allocation3], 1 }
 0xc92   :  { %1249 = vsyncpa [#allocation6], 1 }
 0xc93   :  { %1250 = vsyncpa [#allocation4], 1 }

</bundles_post_ra>
